<compile_context>
chip_gen: v7x
topology: tpu7x:2x2x1
jax: 0.10.0
libtpu: 0.0.40
codegen_flags: <defaults>
</compile_context>

<pallas_src>
import functools

import jax
import jax.numpy as jnp
from jax import lax
from jax.experimental import pallas as pl
from jax.experimental.pallas import tpu as pltpu


# ---------------------------------------------------------------------------
# Kernel 1: batched input projection (non-recurrent, one big MXU matmul).
# ---------------------------------------------------------------------------
def _input_proj_kernel(x_ref, w_ref, b_ref, out_ref):
    # (T*B, D) @ (D, 4H) + (1, 4H) -> (T*B, 4H)
    out_ref[...] = (
        jnp.dot(x_ref[...], w_ref[...], preferred_element_type=jnp.float32)
        + b_ref[...]
    ).astype(out_ref.dtype)


# ---------------------------------------------------------------------------
# Kernel 2: sequential LSTM recurrence, time-chunked.
# ---------------------------------------------------------------------------
def _lstm_recurrent_kernel(gx_ref, w_hh_ref, state_ref,
                           out_ref, state_out_ref,
                           h_sc, c_sc, *, hidden, chunk):
    t = pl.program_id(0)
    H = hidden

    # Load the initial hidden / cell state on the first chunk only.
    @pl.when(t == 0)
    def _():
        h_sc[...] = state_ref[0].astype(jnp.float32)
        c_sc[...] = state_ref[1].astype(jnp.float32)

    w_hh = w_hh_ref[...]            # (H, 4H), loaded once per chunk

    def step(i, carry):
        h, c = carry                                    # (B, H) f32 each
        # gates = precomputed x-projection + h_prev @ W_hh^T   -> (B, 4H)
        gates = gx_ref[i].astype(jnp.float32) + jnp.dot(
            h, w_hh, preferred_element_type=jnp.float32)

        # Gate order (after wrapper-side column permutation): i, f, o, g.
        sig = jax.nn.sigmoid(gates[:, : 3 * H])          # one EUP pass
        g_g = jnp.tanh(gates[:, 3 * H:])                 # one EUP pass
        i_g = sig[:, 0 * H:1 * H]
        f_g = sig[:, 1 * H:2 * H]
        o_g = sig[:, 2 * H:3 * H]

        c_new = f_g * c + i_g * g_g
        h_new = o_g * jnp.tanh(c_new)

        out_ref[i] = h_new.astype(out_ref.dtype)
        return h_new, c_new

    h_fin, c_fin = lax.fori_loop(
        0, chunk, step, (h_sc[...], c_sc[...]), unroll=True)

    # Carry state across grid (chunk) iterations.
    h_sc[...] = h_fin
    c_sc[...] = c_fin

    @pl.when(t == pl.num_programs(0) - 1)
    def _():
        state_out_ref[0] = h_fin.astype(state_out_ref.dtype)
        state_out_ref[1] = c_fin.astype(state_out_ref.dtype)


def _pick_time_chunk(T, max_chunk=16):
    """Largest divisor of T that is <= max_chunk (keeps unroll bounded)."""
    for tc in range(min(T, max_chunk), 0, -1):
        if T % tc == 0:
            return tc
    return 1


# ---------------------------------------------------------------------------
# Wrapper: mirrors RNN.forward(ob_ac, rnn_state) of the PyTorch module.
# ---------------------------------------------------------------------------
@jax.jit
def rnn_forward(ob_ac, rnn_state, w_ih, w_hh, b_ih, b_hh):
    """Pallas-kernel LSTM forward.

    ob_ac:     (T, B, D)  float32
    rnn_state: (2, B, H)  float32   (concat of h_0, c_0 along dim 0)
    w_ih:      (4H, D),  w_hh: (4H, H),  b_ih/b_hh: (4H,)  (PyTorch layout,
               gate order i, f, g, o along the 4H axis)
    returns (out (T, B, H), rnn_state_out (2, B, H))
    """
    T, B, D = ob_ac.shape
    H = w_hh.shape[1]
    Tc = _pick_time_chunk(T)
    num_chunks = T // Tc

    # Permute gate blocks (i, f, g, o) -> (i, f, o, g) so the kernel can use
    # one contiguous sigmoid ([:, :3H]) and one tanh ([:, 3H:]).  Free,
    # wrapper-side plumbing on the weights only.
    perm = jnp.concatenate([
        jnp.arange(0 * H, 1 * H),
        jnp.arange(1 * H, 2 * H),
        jnp.arange(3 * H, 4 * H),
        jnp.arange(2 * H, 3 * H),
    ])
    w_ih_t = jnp.transpose(w_ih[perm]).astype(jnp.float32)     # (D, 4H)
    w_hh_t = jnp.transpose(w_hh[perm]).astype(jnp.float32)     # (H, 4H)
    bias = (b_ih + b_hh)[perm].reshape(1, 4 * H).astype(jnp.float32)

    # ---- Hoisted input projection: one large matmul over all timesteps. ----
    x_flat = ob_ac.reshape(T * B, D).astype(jnp.float32)
    gates_x_flat = pl.pallas_call(
        _input_proj_kernel,
        out_shape=jax.ShapeDtypeStruct((T * B, 4 * H), jnp.float32),
    )(x_flat, w_ih_t, bias)
    gates_x = gates_x_flat.reshape(T, B, 4 * H)

    # ---- Sequential recurrence, chunked over time. ----
    out, state_out = pl.pallas_call(
        functools.partial(_lstm_recurrent_kernel, hidden=H, chunk=Tc),
        out_shape=(
            jax.ShapeDtypeStruct((T, B, H), ob_ac.dtype),
            jax.ShapeDtypeStruct((2, B, H), rnn_state.dtype),
        ),
        grid_spec=pltpu.PrefetchScalarGridSpec(
            num_scalar_prefetch=0,
            grid=(num_chunks,),
            in_specs=[
                pl.BlockSpec((Tc, B, 4 * H), lambda t: (t, 0, 0)),  # gates_x
                pl.BlockSpec((H, 4 * H), lambda t: (0, 0)),         # W_hh^T
                pl.BlockSpec((2, B, H), lambda t: (0, 0, 0)),       # (h0, c0)
            ],
            out_specs=[
                pl.BlockSpec((Tc, B, H), lambda t: (t, 0, 0)),      # out chunk
                pl.BlockSpec((2, B, H), lambda t: (0, 0, 0)),       # (h_n, c_n)
            ],
            scratch_shapes=[
                pltpu.VMEM((B, H), jnp.float32),   # h carry
                pltpu.VMEM((B, H), jnp.float32),   # c carry
            ],
        ),
        compiler_params=pltpu.CompilerParams(
            dimension_semantics=("arbitrary",)),   # time is sequential
    )(gates_x, w_hh_t, rnn_state)

    return out, state_out


# ---------------------------------------------------------------------------
# Pure-JAX reference mirroring torch.nn.LSTM semantics (original gate order).
# ---------------------------------------------------------------------------
def _lstm_reference(ob_ac, rnn_state, w_ih, w_hh, b_ih, b_hh):
    H = w_hh.shape[1]
    h0, c0 = rnn_state[0], rnn_state[1]

    def step(carry, x_t):
        h, c = carry
        gates = x_t @ w_ih.T + h @ w_hh.T + b_ih + b_hh
        i = jax.nn.sigmoid(gates[:, 0 * H:1 * H])
        f = jax.nn.sigmoid(gates[:, 1 * H:2 * H])
        g = jnp.tanh(gates[:, 2 * H:3 * H])
        o = jax.nn.sigmoid(gates[:, 3 * H:4 * H])
        c = f * c + i * g
        h = o * jnp.tanh(c)
        return (h, c), h

    (h_n, c_n), out = jax.lax.scan(step, (h0, c0), ob_ac)
    return out, jnp.stack([h_n, c_n], axis=0)


if __name__ == "__main__":
    # Small shapes consistent with the module: seq=8, batch=2, input_dim=4,
    # hidden (config.rnn_dim) = 32.
    T, B, D, H = 8, 2, 4, 32

    key = jax.random.PRNGKey(0)
    k_x, k_s, k_wi, k_wh, k_bi, k_bh = jax.random.split(key, 6)

    # PyTorch-style LSTM init: U(-1/sqrt(H), 1/sqrt(H)).
    bound = 1.0 / (H ** 0.5)
    w_ih = jax.random.uniform(k_wi, (4 * H, D), jnp.float32, -bound, bound)
    w_hh = jax.random.uniform(k_wh, (4 * H, H), jnp.float32, -bound, bound)
    b_ih = jax.random.uniform(k_bi, (4 * H,), jnp.float32, -bound, bound)
    b_hh = jax.random.uniform(k_bh, (4 * H,), jnp.float32, -bound, bound)

    ob_ac = jax.random.normal(k_x, (T, B, D), jnp.float32)
    rnn_state = jax.random.normal(k_s, (2, B, H), jnp.float32)

    out, state_out = rnn_forward(ob_ac, rnn_state, w_ih, w_hh, b_ih, b_hh)
    out = jax.block_until_ready(out)
    state_out = jax.block_until_ready(state_out)

    out_ref, state_ref = _lstm_reference(ob_ac, rnn_state, w_ih, w_hh, b_ih, b_hh)
    assert out.shape == (T, B, H) and state_out.shape == (2, B, H)
    assert jnp.allclose(out, out_ref, atol=1e-5, rtol=1e-5)
    assert jnp.allclose(state_out, state_ref, atol=1e-5, rtol=1e-5)

    print("KERNEL_OK")
</pallas_src>

<mosaic_0001>
module attributes {stable_mosaic.version = 11 : i64} {
  func.func @_input_proj_kernel(%arg0: memref<16x4xf32, #tpu.memory_space<vmem>>, %arg1: memref<4x128xf32, #tpu.memory_space<vmem>>, %arg2: memref<1x128xf32, #tpu.memory_space<vmem>>, %arg3: memref<16x128xf32, #tpu.memory_space<vmem>>) attributes {dimension_semantics = [], scalar_prefetch = 0 : i64, scratch_operands = 0 : i64, tpu.core_type = #tpu.core_type<tc>} {
    %c0 = arith.constant 0 : index
    %c0_0 = arith.constant 0 : index
    %0 = vector.load %arg0[%c0, %c0_0] : memref<16x4xf32, #tpu.memory_space<vmem>>, vector<16x4xf32>
    %c0_1 = arith.constant 0 : index
    %c0_2 = arith.constant 0 : index
    %1 = vector.load %arg1[%c0_1, %c0_2] : memref<4x128xf32, #tpu.memory_space<vmem>>, vector<4x128xf32>
    %cst = arith.constant dense<0.000000e+00> : vector<16x128xf32>
    %2 = tpu.matmul %0, %1, %cst {dimension_numbers = #tpu.dot_dimension_numbers<[1], [0], [0], [1], [0, 0, 1, 1], [], []>} : vector<16x4xf32>, vector<4x128xf32>, vector<16x128xf32> -> vector<16x128xf32>
    %c0_3 = arith.constant 0 : index
    %c0_4 = arith.constant 0 : index
    %3 = vector.load %arg2[%c0_3, %c0_4] : memref<1x128xf32, #tpu.memory_space<vmem>>, vector<1x128xf32>
    %4 = vector.broadcast %3 : vector<1x128xf32> to vector<16x128xf32>
    %5 = arith.addf %2, %4 : vector<16x128xf32>
    %c0_5 = arith.constant 0 : index
    %c0_6 = arith.constant 0 : index
    %6 = vector.load %arg3[%c0_5, %c0_6] : memref<16x128xf32, #tpu.memory_space<vmem>>, vector<16x128xf32>
    tpu.vector_store %arg3[%c0_5, %c0_6], %5 {strides = array<i32>} : memref<16x128xf32, #tpu.memory_space<vmem>>, vector<16x128xf32>,
    return
  }
}

module attributes {stable_mosaic.version = 11 : i64} {
  func.func @_lstm_recurrent_kernel(%arg0: i32, %arg1: memref<8x2x128xf32, #tpu.memory_space<vmem>>, %arg2: memref<32x128xf32, #tpu.memory_space<vmem>>, %arg3: memref<2x2x32xf32, #tpu.memory_space<vmem>>, %arg4: memref<8x2x32xf32, #tpu.memory_space<vmem>>, %arg5: memref<2x2x32xf32, #tpu.memory_space<vmem>>, %arg6: memref<2x32xf32, #tpu.memory_space<vmem>>, %arg7: memref<2x32xf32, #tpu.memory_space<vmem>>) attributes {dimension_semantics = [#tpu.dimension_semantics<arbitrary>], iteration_bounds = array<i64: 1>, scalar_prefetch = 0 : i64, scratch_operands = 2 : i64, tpu.core_type = #tpu.core_type<tc>, window_params = [{transform_indices = @transform_0, window_bounds = array<i64: 8, 2, 128>}, {pipeline_mode = #tpu.pipeline_mode<synchronous>, transform_indices = @transform_1, window_bounds = array<i64: 32, 128>}, {pipeline_mode = #tpu.pipeline_mode<synchronous>, transform_indices = @transform_2, window_bounds = array<i64: 2, 2, 32>}, {transform_indices = @transform_3, window_bounds = array<i64: 8, 2, 32>}, {pipeline_mode = #tpu.pipeline_mode<synchronous>, transform_indices = @transform_4, window_bounds = array<i64: 2, 2, 32>}]} {
    %c0_i32 = arith.constant 0 : i32
    %0 = arith.cmpi eq, %arg0, %c0_i32 : i32
    %1 = arith.extui %0 : i1 to i32
    %c0_i32_0 = arith.constant 0 : i32
    %2 = arith.cmpi ne, %1, %c0_i32_0 : i32
    scf.if %2 {
      %c0_60 = arith.constant 0 : index
      %c0_61 = arith.constant 0 : index
      %c0_62 = arith.constant 0 : index
      %211 = vector.load %arg3[%c0_60, %c0_61, %c0_62] : memref<2x2x32xf32, #tpu.memory_space<vmem>>, vector<1x2x32xf32>
      %212 = vector.shape_cast %211 : vector<1x2x32xf32> to vector<2x32xf32>
      %c0_63 = arith.constant 0 : index
      %c0_64 = arith.constant 0 : index
      %213 = vector.load %arg6[%c0_63, %c0_64] : memref<2x32xf32, #tpu.memory_space<vmem>>, vector<2x32xf32>
      tpu.vector_store %arg6[%c0_63, %c0_64], %212 {strides = array<i32>} : memref<2x32xf32, #tpu.memory_space<vmem>>, vector<2x32xf32>,
      %c1 = arith.constant 1 : index
      %c0_65 = arith.constant 0 : index
      %c0_66 = arith.constant 0 : index
      %214 = vector.load %arg3[%c1, %c0_65, %c0_66] : memref<2x2x32xf32, #tpu.memory_space<vmem>>, vector<1x2x32xf32>
      %215 = vector.shape_cast %214 : vector<1x2x32xf32> to vector<2x32xf32>
      %c0_67 = arith.constant 0 : index
      %c0_68 = arith.constant 0 : index
      %216 = vector.load %arg7[%c0_67, %c0_68] : memref<2x32xf32, #tpu.memory_space<vmem>>, vector<2x32xf32>
      tpu.vector_store %arg7[%c0_67, %c0_68], %215 {strides = array<i32>} : memref<2x32xf32, #tpu.memory_space<vmem>>, vector<2x32xf32>,
    } else {
    }
    %c0 = arith.constant 0 : index
    %c0_1 = arith.constant 0 : index
    %3 = vector.load %arg2[%c0, %c0_1] : memref<32x128xf32, #tpu.memory_space<vmem>>, vector<32x128xf32>
    %c0_2 = arith.constant 0 : index
    %c0_3 = arith.constant 0 : index
    %4 = vector.load %arg6[%c0_2, %c0_3] : memref<2x32xf32, #tpu.memory_space<vmem>>, vector<2x32xf32>
    %c0_4 = arith.constant 0 : index
    %c0_5 = arith.constant 0 : index
    %5 = vector.load %arg7[%c0_4, %c0_5] : memref<2x32xf32, #tpu.memory_space<vmem>>, vector<2x32xf32>
    %c0_i32_6 = arith.constant 0 : i32
    %6 = arith.index_cast %c0_i32_6 : i32 to index
    %c0_7 = arith.constant 0 : index
    %c0_8 = arith.constant 0 : index
    %7 = vector.load %arg1[%6, %c0_7, %c0_8] : memref<8x2x128xf32, #tpu.memory_space<vmem>>, vector<1x2x128xf32>
    %8 = vector.shape_cast %7 : vector<1x2x128xf32> to vector<2x128xf32>
    %cst = arith.constant dense<0.000000e+00> : vector<2x128xf32>
    %9 = tpu.matmul %4, %3, %cst {dimension_numbers = #tpu.dot_dimension_numbers<[1], [0], [0], [1], [0, 0, 1, 1], [], []>} : vector<2x32xf32>, vector<32x128xf32>, vector<2x128xf32> -> vector<2x128xf32>
    %10 = arith.addf %8, %9 : vector<2x128xf32>
    %11 = vector.extract_strided_slice %10 {offsets = [0, 0], sizes = [2, 96], strides = [1, 1]} : vector<2x128xf32> to vector<2x96xf32>
    %12 = arith.negf %11 : vector<2x96xf32>
    %13 = math.exp %12 : vector<2x96xf32>
    %cst_9 = arith.constant 1.000000e+00 : f32
    %14 = vector.broadcast %cst_9 : f32 to vector<2x96xf32>
    %15 = arith.addf %14, %13 : vector<2x96xf32>
    %16 = arith.divf %14, %15 : vector<2x96xf32>
    %17 = vector.extract_strided_slice %10 {offsets = [0, 96], sizes = [2, 32], strides = [1, 1]} : vector<2x128xf32> to vector<2x32xf32>
    %18 = math.tanh %17 : vector<2x32xf32>
    %19 = vector.extract_strided_slice %16 {offsets = [0, 0], sizes = [2, 32], strides = [1, 1]} : vector<2x96xf32> to vector<2x32xf32>
    %20 = vector.extract_strided_slice %16 {offsets = [0, 32], sizes = [2, 32], strides = [1, 1]} : vector<2x96xf32> to vector<2x32xf32>
    %21 = vector.extract_strided_slice %16 {offsets = [0, 64], sizes = [2, 32], strides = [1, 1]} : vector<2x96xf32> to vector<2x32xf32>
    %22 = arith.mulf %20, %5 : vector<2x32xf32>
    %23 = arith.mulf %19, %18 : vector<2x32xf32>
    %24 = arith.addf %22, %23 : vector<2x32xf32>
    %25 = math.tanh %24 : vector<2x32xf32>
    %26 = arith.mulf %21, %25 : vector<2x32xf32>
    %27 = arith.index_cast %c0_i32_6 : i32 to index
    %c0_10 = arith.constant 0 : index
    %c0_11 = arith.constant 0 : index
    %28 = vector.load %arg4[%27, %c0_10, %c0_11] : memref<8x2x32xf32, #tpu.memory_space<vmem>>, vector<1x2x32xf32>
    %29 = vector.shape_cast %28 : vector<1x2x32xf32> to vector<2x32xf32>
    %30 = vector.shape_cast %26 : vector<2x32xf32> to vector<1x2x32xf32>
    tpu.vector_store %arg4[%27, %c0_10, %c0_11], %30 {strides = array<i32>} : memref<8x2x32xf32, #tpu.memory_space<vmem>>, vector<1x2x32xf32>,
    %c1_i32 = arith.constant 1 : i32
    %31 = arith.index_cast %c1_i32 : i32 to index
    %c0_12 = arith.constant 0 : index
    %c0_13 = arith.constant 0 : index
    %32 = vector.load %arg1[%31, %c0_12, %c0_13] : memref<8x2x128xf32, #tpu.memory_space<vmem>>, vector<1x2x128xf32>
    %33 = vector.shape_cast %32 : vector<1x2x128xf32> to vector<2x128xf32>
    %cst_14 = arith.constant dense<0.000000e+00> : vector<2x128xf32>
    %34 = tpu.matmul %26, %3, %cst_14 {dimension_numbers = #tpu.dot_dimension_numbers<[1], [0], [0], [1], [0, 0, 1, 1], [], []>} : vector<2x32xf32>, vector<32x128xf32>, vector<2x128xf32> -> vector<2x128xf32>
    %35 = arith.addf %33, %34 : vector<2x128xf32>
    %36 = vector.extract_strided_slice %35 {offsets = [0, 0], sizes = [2, 96], strides = [1, 1]} : vector<2x128xf32> to vector<2x96xf32>
    %37 = arith.negf %36 : vector<2x96xf32>
    %38 = math.exp %37 : vector<2x96xf32>
    %cst_15 = arith.constant 1.000000e+00 : f32
    %39 = vector.broadcast %cst_15 : f32 to vector<2x96xf32>
    %40 = arith.addf %39, %38 : vector<2x96xf32>
    %41 = arith.divf %39, %40 : vector<2x96xf32>
    %42 = vector.extract_strided_slice %35 {offsets = [0, 96], sizes = [2, 32], strides = [1, 1]} : vector<2x128xf32> to vector<2x32xf32>
    %43 = math.tanh %42 : vector<2x32xf32>
    %44 = vector.extract_strided_slice %41 {offsets = [0, 0], sizes = [2, 32], strides = [1, 1]} : vector<2x96xf32> to vector<2x32xf32>
    %45 = vector.extract_strided_slice %41 {offsets = [0, 32], sizes = [2, 32], strides = [1, 1]} : vector<2x96xf32> to vector<2x32xf32>
    %46 = vector.extract_strided_slice %41 {offsets = [0, 64], sizes = [2, 32], strides = [1, 1]} : vector<2x96xf32> to vector<2x32xf32>
    %47 = arith.mulf %45, %24 : vector<2x32xf32>
    %48 = arith.mulf %44, %43 : vector<2x32xf32>
    %49 = arith.addf %47, %48 : vector<2x32xf32>
    %50 = math.tanh %49 : vector<2x32xf32>
    %51 = arith.mulf %46, %50 : vector<2x32xf32>
    %52 = arith.index_cast %c1_i32 : i32 to index
    %c0_16 = arith.constant 0 : index
    %c0_17 = arith.constant 0 : index
    %53 = vector.load %arg4[%52, %c0_16, %c0_17] : memref<8x2x32xf32, #tpu.memory_space<vmem>>, vector<1x2x32xf32>
    %54 = vector.shape_cast %53 : vector<1x2x32xf32> to vector<2x32xf32>
    %55 = vector.shape_cast %51 : vector<2x32xf32> to vector<1x2x32xf32>
    tpu.vector_store %arg4[%52, %c0_16, %c0_17], %55 {strides = array<i32>} : memref<8x2x32xf32, #tpu.memory_space<vmem>>, vector<1x2x32xf32>,
    %c2_i32 = arith.constant 2 : i32
    %56 = arith.index_cast %c2_i32 : i32 to index
    %c0_18 = arith.constant 0 : index
    %c0_19 = arith.constant 0 : index
    %57 = vector.load %arg1[%56, %c0_18, %c0_19] : memref<8x2x128xf32, #tpu.memory_space<vmem>>, vector<1x2x128xf32>
    %58 = vector.shape_cast %57 : vector<1x2x128xf32> to vector<2x128xf32>
    %cst_20 = arith.constant dense<0.000000e+00> : vector<2x128xf32>
    %59 = tpu.matmul %51, %3, %cst_20 {dimension_numbers = #tpu.dot_dimension_numbers<[1], [0], [0], [1], [0, 0, 1, 1], [], []>} : vector<2x32xf32>, vector<32x128xf32>, vector<2x128xf32> -> vector<2x128xf32>
    %60 = arith.addf %58, %59 : vector<2x128xf32>
    %61 = vector.extract_strided_slice %60 {offsets = [0, 0], sizes = [2, 96], strides = [1, 1]} : vector<2x128xf32> to vector<2x96xf32>
    %62 = arith.negf %61 : vector<2x96xf32>
    %63 = math.exp %62 : vector<2x96xf32>
    %cst_21 = arith.constant 1.000000e+00 : f32
    %64 = vector.broadcast %cst_21 : f32 to vector<2x96xf32>
    %65 = arith.addf %64, %63 : vector<2x96xf32>
    %66 = arith.divf %64, %65 : vector<2x96xf32>
    %67 = vector.extract_strided_slice %60 {offsets = [0, 96], sizes = [2, 32], strides = [1, 1]} : vector<2x128xf32> to vector<2x32xf32>
    %68 = math.tanh %67 : vector<2x32xf32>
    %69 = vector.extract_strided_slice %66 {offsets = [0, 0], sizes = [2, 32], strides = [1, 1]} : vector<2x96xf32> to vector<2x32xf32>
    %70 = vector.extract_strided_slice %66 {offsets = [0, 32], sizes = [2, 32], strides = [1, 1]} : vector<2x96xf32> to vector<2x32xf32>
    %71 = vector.extract_strided_slice %66 {offsets = [0, 64], sizes = [2, 32], strides = [1, 1]} : vector<2x96xf32> to vector<2x32xf32>
    %72 = arith.mulf %70, %49 : vector<2x32xf32>
    %73 = arith.mulf %69, %68 : vector<2x32xf32>
    %74 = arith.addf %72, %73 : vector<2x32xf32>
    %75 = math.tanh %74 : vector<2x32xf32>
    %76 = arith.mulf %71, %75 : vector<2x32xf32>
    %77 = arith.index_cast %c2_i32 : i32 to index
    %c0_22 = arith.constant 0 : index
    %c0_23 = arith.constant 0 : index
    %78 = vector.load %arg4[%77, %c0_22, %c0_23] : memref<8x2x32xf32, #tpu.memory_space<vmem>>, vector<1x2x32xf32>
    %79 = vector.shape_cast %78 : vector<1x2x32xf32> to vector<2x32xf32>
    %80 = vector.shape_cast %76 : vector<2x32xf32> to vector<1x2x32xf32>
    tpu.vector_store %arg4[%77, %c0_22, %c0_23], %80 {strides = array<i32>} : memref<8x2x32xf32, #tpu.memory_space<vmem>>, vector<1x2x32xf32>,
    %c3_i32 = arith.constant 3 : i32
    %81 = arith.index_cast %c3_i32 : i32 to index
    %c0_24 = arith.constant 0 : index
    %c0_25 = arith.constant 0 : index
    %82 = vector.load %arg1[%81, %c0_24, %c0_25] : memref<8x2x128xf32, #tpu.memory_space<vmem>>, vector<1x2x128xf32>
    %83 = vector.shape_cast %82 : vector<1x2x128xf32> to vector<2x128xf32>
    %cst_26 = arith.constant dense<0.000000e+00> : vector<2x128xf32>
    %84 = tpu.matmul %76, %3, %cst_26 {dimension_numbers = #tpu.dot_dimension_numbers<[1], [0], [0], [1], [0, 0, 1, 1], [], []>} : vector<2x32xf32>, vector<32x128xf32>, vector<2x128xf32> -> vector<2x128xf32>
    %85 = arith.addf %83, %84 : vector<2x128xf32>
    %86 = vector.extract_strided_slice %85 {offsets = [0, 0], sizes = [2, 96], strides = [1, 1]} : vector<2x128xf32> to vector<2x96xf32>
    %87 = arith.negf %86 : vector<2x96xf32>
    %88 = math.exp %87 : vector<2x96xf32>
    %cst_27 = arith.constant 1.000000e+00 : f32
    %89 = vector.broadcast %cst_27 : f32 to vector<2x96xf32>
    %90 = arith.addf %89, %88 : vector<2x96xf32>
    %91 = arith.divf %89, %90 : vector<2x96xf32>
    %92 = vector.extract_strided_slice %85 {offsets = [0, 96], sizes = [2, 32], strides = [1, 1]} : vector<2x128xf32> to vector<2x32xf32>
    %93 = math.tanh %92 : vector<2x32xf32>
    %94 = vector.extract_strided_slice %91 {offsets = [0, 0], sizes = [2, 32], strides = [1, 1]} : vector<2x96xf32> to vector<2x32xf32>
    %95 = vector.extract_strided_slice %91 {offsets = [0, 32], sizes = [2, 32], strides = [1, 1]} : vector<2x96xf32> to vector<2x32xf32>
    %96 = vector.extract_strided_slice %91 {offsets = [0, 64], sizes = [2, 32], strides = [1, 1]} : vector<2x96xf32> to vector<2x32xf32>
    %97 = arith.mulf %95, %74 : vector<2x32xf32>
    %98 = arith.mulf %94, %93 : vector<2x32xf32>
    %99 = arith.addf %97, %98 : vector<2x32xf32>
    %100 = math.tanh %99 : vector<2x32xf32>
    %101 = arith.mulf %96, %100 : vector<2x32xf32>
    %102 = arith.index_cast %c3_i32 : i32 to index
    %c0_28 = arith.constant 0 : index
    %c0_29 = arith.constant 0 : index
    %103 = vector.load %arg4[%102, %c0_28, %c0_29] : memref<8x2x32xf32, #tpu.memory_space<vmem>>, vector<1x2x32xf32>
    %104 = vector.shape_cast %103 : vector<1x2x32xf32> to vector<2x32xf32>
    %105 = vector.shape_cast %101 : vector<2x32xf32> to vector<1x2x32xf32>
    tpu.vector_store %arg4[%102, %c0_28, %c0_29], %105 {strides = array<i32>} : memref<8x2x32xf32, #tpu.memory_space<vmem>>, vector<1x2x32xf32>,
    %c4_i32 = arith.constant 4 : i32
    %106 = arith.index_cast %c4_i32 : i32 to index
    %c0_30 = arith.constant 0 : index
    %c0_31 = arith.constant 0 : index
    %107 = vector.load %arg1[%106, %c0_30, %c0_31] : memref<8x2x128xf32, #tpu.memory_space<vmem>>, vector<1x2x128xf32>
    %108 = vector.shape_cast %107 : vector<1x2x128xf32> to vector<2x128xf32>
    %cst_32 = arith.constant dense<0.000000e+00> : vector<2x128xf32>
    %109 = tpu.matmul %101, %3, %cst_32 {dimension_numbers = #tpu.dot_dimension_numbers<[1], [0], [0], [1], [0, 0, 1, 1], [], []>} : vector<2x32xf32>, vector<32x128xf32>, vector<2x128xf32> -> vector<2x128xf32>
    %110 = arith.addf %108, %109 : vector<2x128xf32>
    %111 = vector.extract_strided_slice %110 {offsets = [0, 0], sizes = [2, 96], strides = [1, 1]} : vector<2x128xf32> to vector<2x96xf32>
    %112 = arith.negf %111 : vector<2x96xf32>
    %113 = math.exp %112 : vector<2x96xf32>
    %cst_33 = arith.constant 1.000000e+00 : f32
    %114 = vector.broadcast %cst_33 : f32 to vector<2x96xf32>
    %115 = arith.addf %114, %113 : vector<2x96xf32>
    %116 = arith.divf %114, %115 : vector<2x96xf32>
    %117 = vector.extract_strided_slice %110 {offsets = [0, 96], sizes = [2, 32], strides = [1, 1]} : vector<2x128xf32> to vector<2x32xf32>
    %118 = math.tanh %117 : vector<2x32xf32>
    %119 = vector.extract_strided_slice %116 {offsets = [0, 0], sizes = [2, 32], strides = [1, 1]} : vector<2x96xf32> to vector<2x32xf32>
    %120 = vector.extract_strided_slice %116 {offsets = [0, 32], sizes = [2, 32], strides = [1, 1]} : vector<2x96xf32> to vector<2x32xf32>
    %121 = vector.extract_strided_slice %116 {offsets = [0, 64], sizes = [2, 32], strides = [1, 1]} : vector<2x96xf32> to vector<2x32xf32>
    %122 = arith.mulf %120, %99 : vector<2x32xf32>
    %123 = arith.mulf %119, %118 : vector<2x32xf32>
    %124 = arith.addf %122, %123 : vector<2x32xf32>
    %125 = math.tanh %124 : vector<2x32xf32>
    %126 = arith.mulf %121, %125 : vector<2x32xf32>
    %127 = arith.index_cast %c4_i32 : i32 to index
    %c0_34 = arith.constant 0 : index
    %c0_35 = arith.constant 0 : index
    %128 = vector.load %arg4[%127, %c0_34, %c0_35] : memref<8x2x32xf32, #tpu.memory_space<vmem>>, vector<1x2x32xf32>
    %129 = vector.shape_cast %128 : vector<1x2x32xf32> to vector<2x32xf32>
    %130 = vector.shape_cast %126 : vector<2x32xf32> to vector<1x2x32xf32>
    tpu.vector_store %arg4[%127, %c0_34, %c0_35], %130 {strides = array<i32>} : memref<8x2x32xf32, #tpu.memory_space<vmem>>, vector<1x2x32xf32>,
    %c5_i32 = arith.constant 5 : i32
    %131 = arith.index_cast %c5_i32 : i32 to index
    %c0_36 = arith.constant 0 : index
    %c0_37 = arith.constant 0 : index
    %132 = vector.load %arg1[%131, %c0_36, %c0_37] : memref<8x2x128xf32, #tpu.memory_space<vmem>>, vector<1x2x128xf32>
    %133 = vector.shape_cast %132 : vector<1x2x128xf32> to vector<2x128xf32>
    %cst_38 = arith.constant dense<0.000000e+00> : vector<2x128xf32>
    %134 = tpu.matmul %126, %3, %cst_38 {dimension_numbers = #tpu.dot_dimension_numbers<[1], [0], [0], [1], [0, 0, 1, 1], [], []>} : vector<2x32xf32>, vector<32x128xf32>, vector<2x128xf32> -> vector<2x128xf32>
    %135 = arith.addf %133, %134 : vector<2x128xf32>
    %136 = vector.extract_strided_slice %135 {offsets = [0, 0], sizes = [2, 96], strides = [1, 1]} : vector<2x128xf32> to vector<2x96xf32>
    %137 = arith.negf %136 : vector<2x96xf32>
    %138 = math.exp %137 : vector<2x96xf32>
    %cst_39 = arith.constant 1.000000e+00 : f32
    %139 = vector.broadcast %cst_39 : f32 to vector<2x96xf32>
    %140 = arith.addf %139, %138 : vector<2x96xf32>
    %141 = arith.divf %139, %140 : vector<2x96xf32>
    %142 = vector.extract_strided_slice %135 {offsets = [0, 96], sizes = [2, 32], strides = [1, 1]} : vector<2x128xf32> to vector<2x32xf32>
    %143 = math.tanh %142 : vector<2x32xf32>
    %144 = vector.extract_strided_slice %141 {offsets = [0, 0], sizes = [2, 32], strides = [1, 1]} : vector<2x96xf32> to vector<2x32xf32>
    %145 = vector.extract_strided_slice %141 {offsets = [0, 32], sizes = [2, 32], strides = [1, 1]} : vector<2x96xf32> to vector<2x32xf32>
    %146 = vector.extract_strided_slice %141 {offsets = [0, 64], sizes = [2, 32], strides = [1, 1]} : vector<2x96xf32> to vector<2x32xf32>
    %147 = arith.mulf %145, %124 : vector<2x32xf32>
    %148 = arith.mulf %144, %143 : vector<2x32xf32>
    %149 = arith.addf %147, %148 : vector<2x32xf32>
    %150 = math.tanh %149 : vector<2x32xf32>
    %151 = arith.mulf %146, %150 : vector<2x32xf32>
    %152 = arith.index_cast %c5_i32 : i32 to index
    %c0_40 = arith.constant 0 : index
    %c0_41 = arith.constant 0 : index
    %153 = vector.load %arg4[%152, %c0_40, %c0_41] : memref<8x2x32xf32, #tpu.memory_space<vmem>>, vector<1x2x32xf32>
    %154 = vector.shape_cast %153 : vector<1x2x32xf32> to vector<2x32xf32>
    %155 = vector.shape_cast %151 : vector<2x32xf32> to vector<1x2x32xf32>
    tpu.vector_store %arg4[%152, %c0_40, %c0_41], %155 {strides = array<i32>} : memref<8x2x32xf32, #tpu.memory_space<vmem>>, vector<1x2x32xf32>,
    %c6_i32 = arith.constant 6 : i32
    %156 = arith.index_cast %c6_i32 : i32 to index
    %c0_42 = arith.constant 0 : index
    %c0_43 = arith.constant 0 : index
    %157 = vector.load %arg1[%156, %c0_42, %c0_43] : memref<8x2x128xf32, #tpu.memory_space<vmem>>, vector<1x2x128xf32>
    %158 = vector.shape_cast %157 : vector<1x2x128xf32> to vector<2x128xf32>
    %cst_44 = arith.constant dense<0.000000e+00> : vector<2x128xf32>
    %159 = tpu.matmul %151, %3, %cst_44 {dimension_numbers = #tpu.dot_dimension_numbers<[1], [0], [0], [1], [0, 0, 1, 1], [], []>} : vector<2x32xf32>, vector<32x128xf32>, vector<2x128xf32> -> vector<2x128xf32>
    %160 = arith.addf %158, %159 : vector<2x128xf32>
    %161 = vector.extract_strided_slice %160 {offsets = [0, 0], sizes = [2, 96], strides = [1, 1]} : vector<2x128xf32> to vector<2x96xf32>
    %162 = arith.negf %161 : vector<2x96xf32>
    %163 = math.exp %162 : vector<2x96xf32>
    %cst_45 = arith.constant 1.000000e+00 : f32
    %164 = vector.broadcast %cst_45 : f32 to vector<2x96xf32>
    %165 = arith.addf %164, %163 : vector<2x96xf32>
    %166 = arith.divf %164, %165 : vector<2x96xf32>
    %167 = vector.extract_strided_slice %160 {offsets = [0, 96], sizes = [2, 32], strides = [1, 1]} : vector<2x128xf32> to vector<2x32xf32>
    %168 = math.tanh %167 : vector<2x32xf32>
    %169 = vector.extract_strided_slice %166 {offsets = [0, 0], sizes = [2, 32], strides = [1, 1]} : vector<2x96xf32> to vector<2x32xf32>
    %170 = vector.extract_strided_slice %166 {offsets = [0, 32], sizes = [2, 32], strides = [1, 1]} : vector<2x96xf32> to vector<2x32xf32>
    %171 = vector.extract_strided_slice %166 {offsets = [0, 64], sizes = [2, 32], strides = [1, 1]} : vector<2x96xf32> to vector<2x32xf32>
    %172 = arith.mulf %170, %149 : vector<2x32xf32>
    %173 = arith.mulf %169, %168 : vector<2x32xf32>
    %174 = arith.addf %172, %173 : vector<2x32xf32>
    %175 = math.tanh %174 : vector<2x32xf32>
    %176 = arith.mulf %171, %175 : vector<2x32xf32>
    %177 = arith.index_cast %c6_i32 : i32 to index
    %c0_46 = arith.constant 0 : index
    %c0_47 = arith.constant 0 : index
    %178 = vector.load %arg4[%177, %c0_46, %c0_47] : memref<8x2x32xf32, #tpu.memory_space<vmem>>, vector<1x2x32xf32>
    %179 = vector.shape_cast %178 : vector<1x2x32xf32> to vector<2x32xf32>
    %180 = vector.shape_cast %176 : vector<2x32xf32> to vector<1x2x32xf32>
    tpu.vector_store %arg4[%177, %c0_46, %c0_47], %180 {strides = array<i32>} : memref<8x2x32xf32, #tpu.memory_space<vmem>>, vector<1x2x32xf32>,
    %c7_i32 = arith.constant 7 : i32
    %181 = arith.index_cast %c7_i32 : i32 to index
    %c0_48 = arith.constant 0 : index
    %c0_49 = arith.constant 0 : index
    %182 = vector.load %arg1[%181, %c0_48, %c0_49] : memref<8x2x128xf32, #tpu.memory_space<vmem>>, vector<1x2x128xf32>
    %183 = vector.shape_cast %182 : vector<1x2x128xf32> to vector<2x128xf32>
    %cst_50 = arith.constant dense<0.000000e+00> : vector<2x128xf32>
    %184 = tpu.matmul %176, %3, %cst_50 {dimension_numbers = #tpu.dot_dimension_numbers<[1], [0], [0], [1], [0, 0, 1, 1], [], []>} : vector<2x32xf32>, vector<32x128xf32>, vector<2x128xf32> -> vector<2x128xf32>
    %185 = arith.addf %183, %184 : vector<2x128xf32>
    %186 = vector.extract_strided_slice %185 {offsets = [0, 0], sizes = [2, 96], strides = [1, 1]} : vector<2x128xf32> to vector<2x96xf32>
    %187 = arith.negf %186 : vector<2x96xf32>
    %188 = math.exp %187 : vector<2x96xf32>
    %cst_51 = arith.constant 1.000000e+00 : f32
    %189 = vector.broadcast %cst_51 : f32 to vector<2x96xf32>
    %190 = arith.addf %189, %188 : vector<2x96xf32>
    %191 = arith.divf %189, %190 : vector<2x96xf32>
    %192 = vector.extract_strided_slice %185 {offsets = [0, 96], sizes = [2, 32], strides = [1, 1]} : vector<2x128xf32> to vector<2x32xf32>
    %193 = math.tanh %192 : vector<2x32xf32>
    %194 = vector.extract_strided_slice %191 {offsets = [0, 0], sizes = [2, 32], strides = [1, 1]} : vector<2x96xf32> to vector<2x32xf32>
    %195 = vector.extract_strided_slice %191 {offsets = [0, 32], sizes = [2, 32], strides = [1, 1]} : vector<2x96xf32> to vector<2x32xf32>
    %196 = vector.extract_strided_slice %191 {offsets = [0, 64], sizes = [2, 32], strides = [1, 1]} : vector<2x96xf32> to vector<2x32xf32>
    %197 = arith.mulf %195, %174 : vector<2x32xf32>
    %198 = arith.mulf %194, %193 : vector<2x32xf32>
    %199 = arith.addf %197, %198 : vector<2x32xf32>
    %200 = math.tanh %199 : vector<2x32xf32>
    %201 = arith.mulf %196, %200 : vector<2x32xf32>
    %202 = arith.index_cast %c7_i32 : i32 to index
    %c0_52 = arith.constant 0 : index
    %c0_53 = arith.constant 0 : index
    %203 = vector.load %arg4[%202, %c0_52, %c0_53] : memref<8x2x32xf32, #tpu.memory_space<vmem>>, vector<1x2x32xf32>
    %204 = vector.shape_cast %203 : vector<1x2x32xf32> to vector<2x32xf32>
    %205 = vector.shape_cast %201 : vector<2x32xf32> to vector<1x2x32xf32>
    tpu.vector_store %arg4[%202, %c0_52, %c0_53], %205 {strides = array<i32>} : memref<8x2x32xf32, #tpu.memory_space<vmem>>, vector<1x2x32xf32>,
    %c8_i32 = arith.constant 8 : i32
    %c0_54 = arith.constant 0 : index
    %c0_55 = arith.constant 0 : index
    %206 = vector.load %arg6[%c0_54, %c0_55] : memref<2x32xf32, #tpu.memory_space<vmem>>, vector<2x32xf32>
    tpu.vector_store %arg6[%c0_54, %c0_55], %201 {strides = array<i32>} : memref<2x32xf32, #tpu.memory_space<vmem>>, vector<2x32xf32>,
    %c0_56 = arith.constant 0 : index
    %c0_57 = arith.constant 0 : index
    %207 = vector.load %arg7[%c0_56, %c0_57] : memref<2x32xf32, #tpu.memory_space<vmem>>, vector<2x32xf32>
    tpu.vector_store %arg7[%c0_56, %c0_57], %199 {strides = array<i32>} : memref<2x32xf32, #tpu.memory_space<vmem>>, vector<2x32xf32>,
    %c0_i32_58 = arith.constant 0 : i32
    %208 = arith.cmpi eq, %arg0, %c0_i32_58 : i32
    %209 = arith.extui %208 : i1 to i32
    %c0_i32_59 = arith.constant 0 : i32
    %210 = arith.cmpi ne, %209, %c0_i32_59 : i32
    scf.if %210 {
      %c0_60 = arith.constant 0 : index
      %c0_61 = arith.constant 0 : index
      %c0_62 = arith.constant 0 : index
      %211 = vector.load %arg5[%c0_60, %c0_61, %c0_62] : memref<2x2x32xf32, #tpu.memory_space<vmem>>, vector<1x2x32xf32>
      %212 = vector.shape_cast %211 : vector<1x2x32xf32> to vector<2x32xf32>
      %213 = vector.shape_cast %201 : vector<2x32xf32> to vector<1x2x32xf32>
      tpu.vector_store %arg5[%c0_60, %c0_61, %c0_62], %213 {strides = array<i32>} : memref<2x2x32xf32, #tpu.memory_space<vmem>>, vector<1x2x32xf32>,
      %c1 = arith.constant 1 : index
      %c0_63 = arith.constant 0 : index
      %c0_64 = arith.constant 0 : index
      %214 = vector.load %arg5[%c1, %c0_63, %c0_64] : memref<2x2x32xf32, #tpu.memory_space<vmem>>, vector<1x2x32xf32>
      %215 = vector.shape_cast %214 : vector<1x2x32xf32> to vector<2x32xf32>
      %216 = vector.shape_cast %199 : vector<2x32xf32> to vector<1x2x32xf32>
      tpu.vector_store %arg5[%c1, %c0_63, %c0_64], %216 {strides = array<i32>} : memref<2x2x32xf32, #tpu.memory_space<vmem>>, vector<1x2x32xf32>,
    } else {
    }
    return
  }
  func.func @transform_0(%arg0: i32) -> (i32, i32, i32) {
    %c0_i32 = arith.constant 0 : i32
    %c0_i32_0 = arith.constant 0 : i32
    %c0_i32_1 = arith.constant 0 : i32
    return %arg0, %c0_i32, %c0_i32_0 : i32, i32, i32
  }
  func.func @transform_1(%arg0: i32) -> (i32, i32) {
    %c0_i32 = arith.constant 0 : i32
    %c0_i32_0 = arith.constant 0 : i32
    %c0_i32_1 = arith.constant 0 : i32
    return %c0_i32, %c0_i32_0 : i32, i32
  }
  func.func @transform_2(%arg0: i32) -> (i32, i32, i32) {
    %c0_i32 = arith.constant 0 : i32
    %c0_i32_0 = arith.constant 0 : i32
    %c0_i32_1 = arith.constant 0 : i32
    %c0_i32_2 = arith.constant 0 : i32
    return %c0_i32, %c0_i32_0, %c0_i32_1 : i32, i32, i32
  }
  func.func @transform_3(%arg0: i32) -> (i32, i32, i32) {
    %c0_i32 = arith.constant 0 : i32
    %c0_i32_0 = arith.constant 0 : i32
    %c0_i32_1 = arith.constant 0 : i32
    return %arg0, %c0_i32, %c0_i32_0 : i32, i32, i32
  }
  func.func @transform_4(%arg0: i32) -> (i32, i32, i32) {
    %c0_i32 = arith.constant 0 : i32
    %c0_i32_0 = arith.constant 0 : i32
    %c0_i32_1 = arith.constant 0 : i32
    %c0_i32_2 = arith.constant 0 : i32
    return %c0_i32, %c0_i32_0, %c0_i32_1 : i32, i32, i32
  }
}

</mosaic_0001>

<bundles_post_ra>
// kernel: rnn_forward.2
= control target key start
LH: loop header
LB: loop body
LE: loop exit
PB: predicated region body
PF: predicated region fallthrough
CT: control target
= control target key end

     0   :  { %vm31_vm0 = vcmask 1043456   ;;  %vm24_vm1 = vcmask 31744   ;;  %s166_s1 = inlined_call_operand.vmem [shape: f32[4,128], index: 1, kind: input, shape index: {}]   ;;  %s167_s0 = inlined_call_operand.vmem [shape: f32[16,4], index: 0, kind: input, shape index: {}]   ;;  %s168_s2 = inlined_call_operand.vmem [shape: f32[1,128], index: 2, kind: input, shape index: {}]   ;;  %s169_s3 = inlined_call_operand.vmem [shape: f32[16,128], index: 3, kind: output, shape index: {}]  }
   0x1   :  { %v16_v0 = vld [vmem:[%s166_s1] sm:$0xf]  ;;  %v15_v2 = vld [vmem:[%s167_s0 + $0x8] sm:$0xff] }
   0x2   :  { %v14_v1 = vld [vmem:[%s167_s0] sm:$0xff]  ;;  %123 = vmatprep.subr.msk.mxu0 %vm31_vm0, %v16_v0 }
   0x3   :  { %125 = vmatprep.mubr.msk.f32.mxu0 %vm24_vm1, %v14_v1  ;;  %124 = vmatpush3.msk.msra.mxu0 %vm31_vm0, %v16_v0  ;;  %v116_v3 = vld [vmem:[%s168_s2] ss:$0 sm:$0xff] }
   0x4   :  { %126 = vmatmul.mubr.msk.f32.vlgmr.msra.gmra.mrb[0].mxu0 %vm24_vm1, %v15_v2 }
  0xd7   :  { %v127_v4 = vpop.f32.mrb[0].mxu0 }
  0xd8   :  { %v107_v5 = vadd.f32 %v127_v4, %v116_v3  ;;  %v101_v6 = vpop.f32.mrb[1].mxu0 }
  0xd9   :  { %v102_v7 = vadd.f32 %v116_v3, %v101_v6 }
  0xda   :  { %111 = vst [vmem:[%s169_s3 + $0x8] sm:$0xff] %v107_v5 }
  0xdb   :  { %110 = vst [vmem:[%s169_s3] sm:$0xff] %v102_v7 }

// kernel: rnn_forward.3
= control target key start
LH: loop header
LB: loop body
LE: loop exit
PB: predicated region body
PF: predicated region fallthrough
CT: control target
= control target key end

     0   :  { %10 = vsyncpa [#allocation5], 0  ;;  %v1244_v3 = vmov 0.0|0.0   ;;  %vm1245_vm0 = vmmov 0   ;;  %v1246_v6 = vmov 0.0   ;;  %vm23_vm1 = vcmask 254976   ;;  %s1462_s0 = inlined_call_operand.vmem [shape: f32[8,2,128], index: 0, kind: input, shape index: {}]   ;;  %s1463_s1 = inlined_call_operand.vmem [shape: f32[32,128], index: 1, kind: input, shape index: {}]   ;;  %s1464_s2 = inlined_call_operand.vmem [shape: f32[2,2,32], index: 2, kind: input, shape index: {}]   ;;  %s1465_s3 = inlined_call_operand.hbm [shape: f32[8,2,32], index: 3, kind: output, shape index: {0}]   ;;  %s1466_s4 = inlined_call_operand.hbm [shape: f32[2,2,32], index: 4, kind: output, shape index: {1}]  }
   0x1   :  { %v28_v0 = vld [vmem:[%s1463_s1] sm:$0xff]  ;;  %v29_v1 = vld [vmem:[%s1463_s1 + $0x8] sm:$0xff]  ;;  %v30_v2 = vld [vmem:[%s1463_s1 + $0x10] sm:$0xff]  ;;  %1075 = vmatprep.subr.bf16.mxu0 %v1244_v3  ;;  %995 = vmatprep.mubr.msk.f32.mxu0 %vm1245_vm0, %v1246_v6 }
   0x2   :  { %v1288_v4 = vpack.c.bf16 %v29_v1, %v28_v0  ;;  %v31_v5 = vld [vmem:[%s1463_s1 + $0x18] sm:$0xff]  ;;  %v22_v7 = vld [vmem:[%s1464_s2] sm:$0x3]  ;;  %1081 = vmatprep.subr.bf16.mxu1 %v1244_v3  ;;  %1006 = vmatprep.mubr.msk.f32.mxu1 %vm1245_vm0, %v1246_v6 }
   0x3   :  { %24 = vst.msk [vmem:[#allocation2] sm:$0x3] %vm23_vm1, %v22_v7 }
   0x4   :  { %11 = vsyncpa [#allocation7], 0  ;;  %1077 = vmatpush3.bf16.msra.mxu0 %v1288_v4  ;;  %v1303_v8 = vpack.c.bf16 %v31_v5, %v30_v2  ;;  %1083 = vmatpush3.bf16.msra.mxu1 %v1288_v4  ;;  %vm35_vm2 = vcmask 261120   ;;  %v923_v10 = vld [vmem:[%s1464_s2 + $0x2] sm:$0x3]  ;;  %s1247_s28 = smov 32  }
   0x5   :  { %1078 = vmatprep.subr.bf16.mxu0 %v1244_v3  ;;  %1084 = vmatprep.subr.bf16.mxu1 %v1244_v3  ;;  %27 = vst.msk [vmem:[#allocation3] sm:$0x3] %vm23_vm1, %v923_v10  ;;  %v34_v11 = vld [vmem:[%s1462_s0] sm:$0x3]  ;;  %s1248_s2 = smov 64   ;;  %s1250_s17 = smov [#allocation4]  }
   0x6   :  { %v926_v31 = vld [vmem:[%s1462_s0 + $0x2] sm:$0x3]  ;;  %v929_v49 = vld [vmem:[%s1462_s0 + $0x4] sm:$0x3]  ;;  %v932_v5 = vld [vmem:[%s1462_s0 + $0x6] sm:$0x3] }
   0x7   :  { %s896_s18 = sshll.u32 %s1250_s17, 4  ;;  %s1251_s19 = smov [#allocation6]   ;;  %s897_s18 = int_to_ptr.vmem [resolvable:$true] %s896_s18 }
   0x8   :  { %1080 = vmatpush3.bf16.msra.mxu0 %v1303_v8  ;;  %1086 = vmatpush3.bf16.msra.mxu1 %v1303_v8  ;;  %s908_s20 = sshll.u32 %s1251_s19, 4  ;;  %s1196_s21 = scalar_lea.vmem %s897_s18, 256  ;;  %s1424_s20 = int_to_ptr.vmem [resolvable:$true] %s908_s20 }
   0x9   :  { %1087 = vmatprep.subr.bf16.mxu0 %v1244_v3  ;;  %1093 = vmatprep.subr.bf16.mxu1 %v1244_v3  ;;  %p1197_p0 = scmp.ne.s32.totalorder %s897_s18, %s1196_s21  ;;  %p1201_p1 = scmp.lt.s32.totalorder %s897_s18, %s897_s18 }
   0xa   :  { %v32_v9 = vld [vmem:[#allocation2] sm:$0x3]  ;;  %p1202_p2 = scmp.lt.s32.totalorder %s1196_s21, %s1196_s21 }
   0xb   :  { %996 = vmatmul.mubr.msk.f32.vlgmr.msra.gmra.mrb[0].mxu0 %vm35_vm2, %v32_v9 }
   0xc   :  { %1089 = vmatpush3.bf16.msra.mxu0 %v1288_v4  ;;  %1017 = vmatprep.mubr.msk.f32.mxu0 %vm1245_vm0, %v1246_v6  ;;  %v33_v16 = vld [vmem:[#allocation3] sm:$0x3]  ;;  %p1203_p3 = por %p1202_p2, %p1201_p1 }
   0xd   :  { %1090 = vmatprep.subr.bf16.mxu0 %v1244_v3 }
   0xe   :  { %p1204_p4 = pnand %p1203_p3, %p1197_p0 }
  0x10   :  { %1092 = vmatpush3.bf16.msra.mxu0 %v1303_v8 }
  0x11   :  { %1099 = vmatprep.subr.bf16.mxu0 %v1244_v3 }
  0xde   :  { %v105_v12 = vpop.f32.mrb[0].mxu0 }
  0xdf   :  { %v109_v13 = vadd.f32 %v105_v12, %v34_v11  ;;  %v997_v14 = vpop.f32.mrb[1].mxu0 }
  0xe1   :  { %1132 = vtanh.f32 %v109_v13  ;;  %v925_v17 = vmul.f32 -1.442695, %v109_v13 }
  0xe3   :  { %1134 = vpow2.f32 %v925_v17 }
  0xeb   :  { %v1133_v15 = vpop.eup %1132 }
  0xec   :  { %123 = vrot.lane.b32.xlu0 %v1133_v15, %s1247_s28 }
  0xed   :  { %v1135_v18 = vpop.eup %1134 }
  0xee   :  { %v113_v19 = vadd.f32 1.0, %v1135_v18 }
  0xf0   :  { %118 = vrot.lane.b32.xlu0 %v33_v16, %s1247_s28  ;;  %1136 = vrcp.f32 %v113_v19 }
  0xfa   :  { %v1137_v20 = vpop.eup %1136 }
 0x15e   :  { %v124_v21 = vpop.permute.xlu0 %123 }
 0x15f   :  { %v126_v22 = vmul.f32 %v1137_v20, %v124_v21 }
 0x161   :  { %128 = vrot.lane.b32.xlu1 %v126_v22, %s1247_s28 }
 0x162   :  { %v119_v23 = vpop.permute.xlu0 %118 }
 0x163   :  { %v121_v24 = vmul.f32 %v1137_v20, %v119_v23 }
 0x1d3   :  { %v129_v25 = vpop.permute.xlu1 %128 }
 0x1d4   :  { %v131_v26 = vadd.f32 %v129_v25, %v121_v24  ;;  %v935_v25 = vld [vmem:[%s1462_s0 + $0x8] sm:$0x3] }
 0x1d6   :  { %1138 = vtanh.f32 %v131_v26 }
 0x1e0   :  { %v1139_v27 = vpop.eup %1138 }
 0x1e1   :  { %134 = vrot.lane.b32.xlu1 %v1139_v27, %s1247_s28 }
 0x253   :  { %v135_v28 = vpop.permute.xlu1 %134 }
 0x254   :  { %v137_v29 = vmul.f32 %v1137_v20, %v135_v28 }
 0x256   :  { %139 = vrot.lane.b32.xlu0 %v137_v29, %s1248_s2 }
 0x2c8   :  { %v140_v30 = vpop.permute.xlu0 %139 }
 0x2c9   :  { %143 = vst.msk [vmem:[#allocation4] sm:$0x3] %vm23_vm1, %v140_v30  ;;  %1007 = vmatmul.mubr.msk.f32.vlgmr.msra.gmra.mrb[0].mxu1 %vm35_vm2, %v140_v30 }
 0x2ca   :  { %1095 = vmatpush3.bf16.msra.mxu1 %v1288_v4  ;;  %1028 = vmatprep.mubr.msk.f32.mxu1 %vm1245_vm0, %v1246_v6 }
 0x2cb   :  { %1096 = vmatprep.subr.bf16.mxu1 %v1244_v3 }
 0x2ce   :  { %1098 = vmatpush3.bf16.msra.mxu1 %v1303_v8 }
 0x2cf   :  { %1105 = vmatprep.subr.bf16.mxu1 %v1244_v3 }
 0x39c   :  { %v214_v32 = vpop.f32.mrb[0].mxu1 }
 0x39d   :  { %v218_v33 = vadd.f32 %v926_v31, %v214_v32  ;;  %v1008_v34 = vpop.f32.mrb[1].mxu1 }
 0x39f   :  { %1140 = vtanh.f32 %v218_v33  ;;  %v928_v36 = vmul.f32 -1.442695, %v218_v33 }
 0x3a1   :  { %1142 = vpow2.f32 %v928_v36 }
 0x3a9   :  { %v1141_v35 = vpop.eup %1140 }
 0x3aa   :  { %228 = vrot.lane.b32.xlu1 %v1141_v35, %s1247_s28 }
 0x3ab   :  { %v1143_v37 = vpop.eup %1142 }
 0x3ac   :  { %v222_v38 = vadd.f32 1.0, %v1143_v37 }
 0x3ae   :  { %1144 = vrcp.f32 %v222_v38 }
 0x3b8   :  { %v1145_v39 = vpop.eup %1144 }
 0x3b9   :  { %v226_v42 = vmul.f32 %v1145_v39, %v131_v26 }
 0x41c   :  { %v229_v40 = vpop.permute.xlu1 %228 }
 0x41d   :  { %v231_v41 = vmul.f32 %v1145_v39, %v229_v40 }
 0x41f   :  { %233 = vrot.lane.b32.xlu0 %v231_v41, %s1247_s28 }
 0x491   :  { %v234_v43 = vpop.permute.xlu0 %233 }
 0x492   :  { %v236_v44 = vadd.f32 %v234_v43, %v226_v42  ;;  %v938_v43 = vld [vmem:[%s1462_s0 + $0xa] sm:$0x3] }
 0x494   :  { %1146 = vtanh.f32 %v236_v44 }
 0x49e   :  { %v1147_v45 = vpop.eup %1146 }
 0x49f   :  { %239 = vrot.lane.b32.xlu1 %v1147_v45, %s1247_s28 }
 0x511   :  { %v240_v46 = vpop.permute.xlu1 %239 }
 0x512   :  { %v242_v47 = vmul.f32 %v1145_v39, %v240_v46 }
 0x514   :  { %244 = vrot.lane.b32.xlu0 %v242_v47, %s1248_s2 }
 0x586   :  { %v245_v48 = vpop.permute.xlu0 %244 }
 0x587   :  { %248 = vst.msk [vmem:[#allocation4 + $0x2] sm:$0x3] %vm23_vm1, %v245_v48  ;;  %1018 = vmatmul.mubr.msk.f32.vlgmr.msra.gmra.mrb[2].mxu0 %vm35_vm2, %v245_v48 }
 0x588   :  { %1101 = vmatpush3.bf16.msra.mxu0 %v1288_v4  ;;  %1039 = vmatprep.mubr.msk.f32.mxu0 %vm1245_vm0, %v1246_v6 }
 0x589   :  { %1102 = vmatprep.subr.bf16.mxu0 %v1244_v3 }
 0x58c   :  { %1104 = vmatpush3.bf16.msra.mxu0 %v1303_v8 }
 0x58d   :  { %1111 = vmatprep.subr.bf16.mxu0 %v1244_v3 }
 0x65a   :  { %v319_v50 = vpop.f32.mrb[2].mxu0 }
 0x65b   :  { %v323_v51 = vadd.f32 %v929_v49, %v319_v50  ;;  %v1019_v52 = vpop.f32.mrb[3].mxu0 }
 0x65d   :  { %1148 = vtanh.f32 %v323_v51  ;;  %v931_v54 = vmul.f32 -1.442695, %v323_v51 }
 0x65f   :  { %1150 = vpow2.f32 %v931_v54 }
 0x667   :  { %v1149_v53 = vpop.eup %1148 }
 0x668   :  { %333 = vrot.lane.b32.xlu1 %v1149_v53, %s1247_s28 }
 0x669   :  { %v1151_v55 = vpop.eup %1150 }
 0x66a   :  { %v327_v56 = vadd.f32 1.0, %v1151_v55 }
 0x66c   :  { %1152 = vrcp.f32 %v327_v56 }
 0x676   :  { %v1153_v57 = vpop.eup %1152 }
 0x677   :  { %v331_v60 = vmul.f32 %v1153_v57, %v236_v44 }
 0x6da   :  { %v334_v58 = vpop.permute.xlu1 %333 }
 0x6db   :  { %v336_v59 = vmul.f32 %v1153_v57, %v334_v58 }
 0x6dd   :  { %338 = vrot.lane.b32.xlu0 %v336_v59, %s1247_s28 }
 0x74f   :  { %v339_v61 = vpop.permute.xlu0 %338 }
 0x750   :  { %v341_v62 = vadd.f32 %v339_v61, %v331_v60 }
 0x752   :  { %1154 = vtanh.f32 %v341_v62 }
 0x75c   :  { %v1155_v63 = vpop.eup %1154 }
 0x75d   :  { %344 = vrot.lane.b32.xlu1 %v1155_v63, %s1247_s28 }
 0x7cf   :  { %v345_v0 = vpop.permute.xlu1 %344 }
 0x7d0   :  { %v347_v1 = vmul.f32 %v1153_v57, %v345_v0  ;;  %v941_v57 = vld [vmem:[%s1462_s0 + $0xc] sm:$0x3] }
 0x7d2   :  { %349 = vrot.lane.b32.xlu0 %v347_v1, %s1248_s2 }
 0x844   :  { %v350_v2 = vpop.permute.xlu0 %349 }
 0x845   :  { %353 = vst.msk [vmem:[#allocation4 + $0x4] sm:$0x3] %vm23_vm1, %v350_v2  ;;  %1029 = vmatmul.mubr.msk.f32.vlgmr.msra.gmra.mrb[2].mxu1 %vm35_vm2, %v350_v2 }
 0x846   :  { %1107 = vmatpush3.bf16.msra.mxu1 %v1288_v4  ;;  %1050 = vmatprep.mubr.msk.f32.mxu1 %vm1245_vm0, %v1246_v6 }
 0x847   :  { %1108 = vmatprep.subr.bf16.mxu1 %v1244_v3 }
 0x84a   :  { %1110 = vmatpush3.bf16.msra.mxu1 %v1303_v8 }
 0x84b   :  { %1117 = vmatprep.subr.bf16.mxu1 %v1244_v3 }
 0x918   :  { %v424_v7 = vpop.f32.mrb[2].mxu1 }
 0x919   :  { %v428_v9 = vadd.f32 %v932_v5, %v424_v7  ;;  %v1030_v10 = vpop.f32.mrb[3].mxu1 }
 0x91b   :  { %1156 = vtanh.f32 %v428_v9  ;;  %v934_v12 = vmul.f32 -1.442695, %v428_v9 }
 0x91d   :  { %1158 = vpow2.f32 %v934_v12 }
 0x925   :  { %v1157_v11 = vpop.eup %1156 }
 0x926   :  { %438 = vrot.lane.b32.xlu1 %v1157_v11, %s1247_s28 }
 0x927   :  { %v1159_v13 = vpop.eup %1158 }
 0x928   :  { %v432_v14 = vadd.f32 1.0, %v1159_v13 }
 0x92a   :  { %1160 = vrcp.f32 %v432_v14 }
 0x934   :  { %v1161_v15 = vpop.eup %1160 }
 0x935   :  { %v436_v18 = vmul.f32 %v1161_v15, %v341_v62 }
 0x998   :  { %v439_v16 = vpop.permute.xlu1 %438 }
 0x999   :  { %v441_v17 = vmul.f32 %v1161_v15, %v439_v16 }
 0x99b   :  { %443 = vrot.lane.b32.xlu0 %v441_v17, %s1247_s28 }
 0xa0d   :  { %v444_v19 = vpop.permute.xlu0 %443 }
 0xa0e   :  { %v446_v20 = vadd.f32 %v444_v19, %v436_v18 }
 0xa10   :  { %1162 = vtanh.f32 %v446_v20 }
 0xa1a   :  { %v1163_v21 = vpop.eup %1162 }
 0xa1b   :  { %449 = vrot.lane.b32.xlu1 %v1163_v21, %s1247_s28 }
 0xa8d   :  { %v450_v22 = vpop.permute.xlu1 %449 }
 0xa8e   :  { %v452_v23 = vmul.f32 %v1161_v15, %v450_v22  ;;  %v944_v15 = vld [vmem:[%s1462_s0 + $0xe] sm:$0x3]  ;;  %s1249_s0 = smov 96  }
 0xa90   :  { %454 = vrot.lane.b32.xlu0 %v452_v23, %s1248_s2 }
 0xb02   :  { %v455_v24 = vpop.permute.xlu0 %454 }
 0xb03   :  { %458 = vst.msk [vmem:[#allocation4 + $0x6] sm:$0x3] %vm23_vm1, %v455_v24  ;;  %1040 = vmatmul.mubr.msk.f32.vlgmr.msra.gmra.mrb[4].mxu0 %vm35_vm2, %v455_v24 }
 0xb04   :  { %1113 = vmatpush3.bf16.msra.mxu0 %v1288_v4  ;;  %1061 = vmatprep.mubr.msk.f32.mxu0 %vm1245_vm0, %v1246_v6 }
 0xb05   :  { %1114 = vmatprep.subr.bf16.mxu0 %v1244_v3 }
 0xb08   :  { %1116 = vmatpush3.bf16.msra.mxu0 %v1303_v8 }
 0xbd6   :  { %v529_v26 = vpop.f32.mrb[4].mxu0 }
 0xbd7   :  { %v533_v27 = vadd.f32 %v935_v25, %v529_v26  ;;  %v1041_v28 = vpop.f32.mrb[5].mxu0 }
 0xbd9   :  { %1164 = vtanh.f32 %v533_v27  ;;  %v937_v30 = vmul.f32 -1.442695, %v533_v27 }
 0xbdb   :  { %1166 = vpow2.f32 %v937_v30 }
 0xbe3   :  { %v1165_v29 = vpop.eup %1164 }
 0xbe4   :  { %543 = vrot.lane.b32.xlu1 %v1165_v29, %s1247_s28 }
 0xbe5   :  { %v1167_v31 = vpop.eup %1166 }
 0xbe6   :  { %v537_v32 = vadd.f32 1.0, %v1167_v31 }
 0xbe8   :  { %1168 = vrcp.f32 %v537_v32 }
 0xbf2   :  { %v1169_v33 = vpop.eup %1168 }
 0xbf3   :  { %v541_v36 = vmul.f32 %v1169_v33, %v446_v20 }
 0xc56   :  { %v544_v34 = vpop.permute.xlu1 %543 }
 0xc57   :  { %v546_v35 = vmul.f32 %v1169_v33, %v544_v34 }
 0xc59   :  { %548 = vrot.lane.b32.xlu0 %v546_v35, %s1247_s28 }
 0xccb   :  { %v549_v37 = vpop.permute.xlu0 %548 }
 0xccc   :  { %v551_v38 = vadd.f32 %v549_v37, %v541_v36 }
 0xcce   :  { %1170 = vtanh.f32 %v551_v38 }
 0xcd8   :  { %v1171_v39 = vpop.eup %1170 }
 0xcd9   :  { %554 = vrot.lane.b32.xlu1 %v1171_v39, %s1247_s28 }
 0xd4b   :  { %v555_v40 = vpop.permute.xlu1 %554 }
 0xd4c   :  { %v557_v41 = vmul.f32 %v1169_v33, %v555_v40 }
 0xd4e   :  { %559 = vrot.lane.b32.xlu0 %v557_v41, %s1248_s2 }
 0xdc0   :  { %v560_v42 = vpop.permute.xlu0 %559 }
 0xdc1   :  { %563 = vst.msk [vmem:[#allocation4 + $0x8] sm:$0x3] %vm23_vm1, %v560_v42  ;;  %1051 = vmatmul.mubr.msk.f32.vlgmr.msra.gmra.mrb[4].mxu1 %vm35_vm2, %v560_v42 }
 0xdc2   :  { %1119 = vmatpush3.bf16.msra.mxu1 %v1288_v4  ;;  %1072 = vmatprep.mubr.msk.f32.mxu1 %vm1245_vm0, %v1246_v6 }
 0xdc3   :  { %1120 = vmatprep.subr.bf16.mxu1 %v1244_v3 }
 0xdc6   :  { %1122 = vmatpush3.bf16.msra.mxu1 %v1303_v8 }
 0xe94   :  { %v634_v44 = vpop.f32.mrb[4].mxu1 }
 0xe95   :  { %v638_v45 = vadd.f32 %v938_v43, %v634_v44  ;;  %v1052_v46 = vpop.f32.mrb[5].mxu1 }
 0xe97   :  { %1172 = vtanh.f32 %v638_v45  ;;  %v940_v48 = vmul.f32 -1.442695, %v638_v45 }
 0xe99   :  { %1174 = vpow2.f32 %v940_v48 }
 0xea1   :  { %v1173_v47 = vpop.eup %1172 }
 0xea2   :  { %648 = vrot.lane.b32.xlu1 %v1173_v47, %s1247_s28 }
 0xea3   :  { %v1175_v4 = vpop.eup %1174 }
 0xea4   :  { %v642_v49 = vadd.f32 1.0, %v1175_v4 }
 0xea6   :  { %1176 = vrcp.f32 %v642_v49 }
 0xeb0   :  { %v1177_v6 = vpop.eup %1176 }
 0xeb1   :  { %v646_v8 = vmul.f32 %v1177_v6, %v551_v38 }
 0xf14   :  { %v649_v3 = vpop.permute.xlu1 %648 }
 0xf15   :  { %v651_v50 = vmul.f32 %v1177_v6, %v649_v3 }
 0xf17   :  { %653 = vrot.lane.b32.xlu0 %v651_v50, %s1247_s28 }
 0xf89   :  { %v654_v51 = vpop.permute.xlu0 %653 }
 0xf8a   :  { %v656_v52 = vadd.f32 %v654_v51, %v646_v8 }
 0xf8c   :  { %1178 = vtanh.f32 %v656_v52 }
 0xf96   :  { %v1179_v53 = vpop.eup %1178 }
 0xf97   :  { %659 = vrot.lane.b32.xlu1 %v1179_v53, %s1247_s28 }
0x1009   :  { %v660_v54 = vpop.permute.xlu1 %659 }
0x100a   :  { %v662_v55 = vmul.f32 %v1177_v6, %v660_v54 }
0x100c   :  { %664 = vrot.lane.b32.xlu0 %v662_v55, %s1248_s2 }
0x107e   :  { %v665_v56 = vpop.permute.xlu0 %664 }
0x107f   :  { %668 = vst.msk [vmem:[#allocation4 + $0xa] sm:$0x3] %vm23_vm1, %v665_v56  ;;  %1062 = vmatmul.mubr.msk.f32.vlgmr.msra.gmra.mrb[6].mxu0 %vm35_vm2, %v665_v56 }
0x1152   :  { %v739_v58 = vpop.f32.mrb[6].mxu0 }
0x1153   :  { %v743_v59 = vadd.f32 %v941_v57, %v739_v58  ;;  %v1063_v60 = vpop.f32.mrb[7].mxu0 }
0x1155   :  { %1180 = vtanh.f32 %v743_v59  ;;  %v943_v62 = vmul.f32 -1.442695, %v743_v59 }
0x1157   :  { %1182 = vpow2.f32 %v943_v62 }
0x115f   :  { %v1181_v61 = vpop.eup %1180 }
0x1160   :  { %753 = vrot.lane.b32.xlu1 %v1181_v61, %s1247_s28 }
0x1161   :  { %v1183_v63 = vpop.eup %1182 }
0x1162   :  { %v747_v0 = vadd.f32 1.0, %v1183_v63 }
0x1164   :  { %1184 = vrcp.f32 %v747_v0 }
0x116e   :  { %v1185_v1 = vpop.eup %1184 }
0x116f   :  { %v751_v7 = vmul.f32 %v1185_v1, %v656_v52 }
0x11d2   :  { %v754_v2 = vpop.permute.xlu1 %753 }
0x11d3   :  { %v756_v5 = vmul.f32 %v1185_v1, %v754_v2 }
0x11d5   :  { %758 = vrot.lane.b32.xlu0 %v756_v5, %s1247_s28 }
0x1247   :  { %v759_v9 = vpop.permute.xlu0 %758 }
0x1248   :  { %v761_v10 = vadd.f32 %v759_v9, %v751_v7 }
0x124a   :  { %1186 = vtanh.f32 %v761_v10 }
0x1254   :  { %v1187_v11 = vpop.eup %1186 }
0x1255   :  { %764 = vrot.lane.b32.xlu1 %v1187_v11, %s1247_s28 }
0x12c7   :  { %v765_v12 = vpop.permute.xlu1 %764 }
0x12c8   :  { %v767_v13 = vmul.f32 %v1185_v1, %v765_v12 }
0x12ca   :  { %769 = vrot.lane.b32.xlu0 %v767_v13, %s1248_s2 }
0x133c   :  { %v770_v14 = vpop.permute.xlu0 %769 }
0x133d   :  { %773 = vst.msk [vmem:[#allocation4 + $0xc] sm:$0x3] %vm23_vm1, %v770_v14  ;;  %1073 = vmatmul.mubr.msk.f32.vlgmr.msra.gmra.mrb[6].mxu1 %vm35_vm2, %v770_v14 }
0x1410   :  { %v844_v16 = vpop.f32.mrb[6].mxu1 }
0x1411   :  { %v848_v17 = vadd.f32 %v944_v15, %v844_v16  ;;  %v1074_v18 = vpop.f32.mrb[7].mxu1 }
0x1413   :  { %1188 = vtanh.f32 %v848_v17  ;;  %v946_v20 = vmul.f32 -1.442695, %v848_v17 }
0x1415   :  { %1190 = vpow2.f32 %v946_v20 }
0x141d   :  { %v1189_v19 = vpop.eup %1188 }
0x141e   :  { %858 = vrot.lane.b32.xlu1 %v1189_v19, %s1247_s28 }
0x141f   :  { %v1191_v21 = vpop.eup %1190 }
0x1420   :  { %v852_v22 = vadd.f32 1.0, %v1191_v21 }
0x1422   :  { %1192 = vrcp.f32 %v852_v22 }
0x142c   :  { %v1193_v23 = vpop.eup %1192 }
0x142d   :  { %v856_v26 = vmul.f32 %v1193_v23, %v761_v10 }
0x1490   :  { %v859_v24 = vpop.permute.xlu1 %858 }
0x1491   :  { %v861_v25 = vmul.f32 %v1193_v23, %v859_v24 }
0x1493   :  { %863 = vrot.lane.b32.xlu0 %v861_v25, %s1247_s28 }
0x1505   :  { %v864_v27 = vpop.permute.xlu0 %863 }
0x1506   :  { %v866_v28 = vadd.f32 %v864_v27, %v856_v26 }
0x1508   :  { %1194 = vtanh.f32 %v866_v28 }
0x1512   :  { %v1195_v29 = vpop.eup %1194 }
0x1513   :  { %869 = vrot.lane.b32.xlu1 %v1195_v29, %s1247_s28 }
0x1517   :  { %881 = vrot.lane.b32.xlu1 %v866_v28, %s1249_s0 }
0x1585   :  { %v870_v30 = vpop.permute.xlu1 %869 }
0x1586   :  { %v872_v31 = vmul.f32 %v1193_v23, %v870_v30 }
0x1588   :  { %874 = vrot.lane.b32.xlu0 %v872_v31, %s1248_s2 }
0x1589   :  { %v882_v32 = vpop.permute.xlu1 %881 }
0x158a   :  { %884 = vst.msk [vmem:[#allocation3] sm:$0x3] %vm23_vm1, %v882_v32  ;;  %890 = vst.msk [vmem:[#allocation6 + $0x2] sm:$0x3] %vm23_vm1, %v882_v32 }
0x15fa   :  { %v875_v33 = vpop.permute.xlu0 %874 }
0x15fb   :  { %878 = vst.msk [vmem:[#allocation4 + $0xe] sm:$0x3] %vm23_vm1, %v875_v33  ;;  %879 = vst.msk [vmem:[#allocation2] sm:$0x3] %vm23_vm1, %v875_v33 }
0x15fc   :  { %888 = vst.msk [vmem:[#allocation6] sm:$0x3] %vm23_vm1, %v875_v33 }
0x15fd   :  { %1207 = shalt.err (!%p1204_p4)
}
0x15fe   :  { %s1208_s24 = scalar_lea.hbm %s1465_s3, 256 }
0x15ff   :  { %p1209_p5 = scmp.ne.s32.totalorder %s1465_s3, %s1208_s24  ;;  %p1212_p6 = scmp.lt.u32.totalorder %s1208_s24, %s1465_s3 }
0x1601   :  { %p1214_p7 = pnand %p1212_p6, %p1209_p5 }
0x1603   :  { %1217 = shalt.err (!%p1214_p7)
}
0x1604   :  { %s1252_s2 = smov 2   ;;  %s1218_s5 = scalar_lea.vmem %s1424_s20, 64 }
0x1605   :  { %902 = dma.vmem_to_hbm [thread:$0]  %s897_s18, 256, %s1465_s3, [#allocation5], %s1247_s28, %s1247_s28, %s1252_s2  }
0x1606   :  { %p1219_p8 = scmp.ne.s32.totalorder %s1424_s20, %s1218_s5  ;;  %p1223_p9 = scmp.lt.s32.totalorder %s1424_s20, %s1424_s20 }
0x1607   :  { %p1224_p10 = scmp.lt.s32.totalorder %s1218_s5, %s1218_s5 }
0x1609   :  { %p1225_p11 = por %p1224_p10, %p1223_p9 }
0x160b   :  { %p1226_p12 = pnand %p1225_p11, %p1219_p8 }
0x160d   :  { %1229 = shalt.err (!%p1226_p12)
}
0x160e   :  { %s1230_s8 = scalar_lea.hbm %s1466_s4, 64 }
0x160f   :  { %p1231_p13 = scmp.ne.s32.totalorder %s1466_s4, %s1230_s8  ;;  %p1234_p0 = scmp.lt.u32.totalorder %s1230_s8, %s1466_s4 }
0x1611   :  { %p1236_p1 = pnand %p1234_p0, %p1231_p13 }
0x1613   :  { %1239 = shalt.err (!%p1236_p1)
}
0x1614   :  { %914 = dma.vmem_to_hbm [thread:$0]  %s1424_s20, 64, %s1466_s4, [#allocation7], %s1247_s28, %s1247_s28, %s1252_s2  }
0x1615   :  { %1240 = dma.done.wait [#allocation5], 256  }
0x1616   :  { %1241 = vsyncadd [#allocation5], 4294967040 }
0x1617   :  { %1242 = dma.done.wait [#allocation7], 64  }
0x1618   :  { %1243 = vsyncadd [#allocation7], 4294967232 }
0x1619   :  { %921 = vsyncpa [#allocation5], 1 }
0x161a   :  { %922 = vsyncpa [#allocation7], 1 }

</bundles_post_ra>
